<compile_context>
chip_gen: v6e
topology: v6e:2x2x1
jax: 0.10.0
libtpu: 0.0.40
codegen_flags: <defaults>
</compile_context>

<pallas_src>
import math

import jax
import jax.numpy as jnp
from jax.experimental import pallas as pl
from jax.experimental.pallas import tpu as pltpu


def _make_kernel(*, C, L, Tc, n_full, tail_rows, n_inner, n_outer, threshold):
    # Compare the channel SUM against C*threshold (== mean < threshold up to
    # fp rounding; exact for power-of-two C).
    thr_sum = float(threshold) * C
    pow2 = (C & (C - 1)) == 0

    def kernel(rendered_ref, real_ref, out_ref):
        o = pl.program_id(0)          # parallel axis (v7x: one per TensorCore)
        i = pl.program_id(1)          # arbitrary (accumulation) axis

        @pl.when(i == 0)
        def _init():
            out_ref[...] = jnp.zeros((1, 1, 128), jnp.float32)

        # Data-independent lane-selection probe: one (1, L) vreg row per grid
        # step.  Picks, per C-lane pixel group, the single lane that holds the
        # full windowed sum after the roll tree, correct under either hardware
        # roll-direction convention.
        if C > 1:
            lane = jax.lax.broadcasted_iota(jnp.int32, (1, L), 1)
            m = lane % C
            r1 = pltpu.roll(lane, 1, axis=1)
            sel = (((m == C - 1) & (r1 == lane - 1))
                   | ((m == 0) & (r1 == lane + 1)))
        else:
            sel = None

        def accumulate(valid_rows):
            s = rendered_ref[...].astype(jnp.float32)   # Si (rendered)
            f = real_ref[...].astype(jnp.float32)       # Fi (real)
            d = f - s
            d2 = d * d
            if C == 1:
                keep = jnp.abs(d) < thr_sum
                sq = d2
            else:
                a = jnp.abs(d)
                sa, sq = a, d2
                # Windowed sums over C adjacent lanes (= one pixel's channels).
                if pow2:                         # power of two: log-step tree
                    shift = 1
                    while shift < C:
                        sa = sa + pltpu.roll(sa, shift, axis=1)
                        sq = sq + pltpu.roll(sq, shift, axis=1)
                        shift *= 2
                else:                            # general C: C-1 rolls
                    for k in range(1, C):
                        sa = sa + pltpu.roll(a, k, axis=1)
                        sq = sq + pltpu.roll(d2, k, axis=1)
                keep = sel & (sa < thr_sum)
            contrib = jnp.where(keep, sq, 0.0)

            # Static ragged-row mask: only emitted for the one ragged chunk.
            if valid_rows is not None:
                row = jax.lax.broadcasted_iota(jnp.int32, (Tc, 1), 0)
                contrib = jnp.where(row < valid_rows, contrib, 0.0)

            # Fold columns to a lane-dense (1, 128) partial, accumulate into
            # the VMEM-resident output block.
            v = contrib[:, 0:128]
            for j in range(1, L // 128):
                v = v + contrib[:, j * 128:(j + 1) * 128]
            out_ref[0] += jnp.sum(v, axis=0, keepdims=True)

        gb = o * n_inner + i          # global row-chunk index
        if n_outer * n_inner == n_full and tail_rows == 0:
            # Every grid step is a full chunk: no gating, no masking at all.
            accumulate(None)
        else:
            @pl.when(gb < n_full)     # full chunks pay zero masking cost
            def _full():
                accumulate(None)

            if tail_rows:             # static: only exists if R % Tc != 0
                @pl.when(gb == n_full)
                def _ragged():
                    accumulate(tail_rows)
            # gb >= n_chunks (<=1 grid-padding step): contributes nothing.

    return kernel


def photometric_loss(rendered_img, real_img, *, threshold=0.1,
                     target_step_bytes=2 * 1024 * 1024):
    """rendered_img, real_img: (..., C) float arrays. Returns scalar f32 loss."""
    assert rendered_img.shape == real_img.shape
    assert rendered_img.dtype == real_img.dtype
    C = rendered_img.shape[-1]
    E = math.prod(rendered_img.shape)

    # Lane-dense row width: smallest multiple of both 128 (full vreg lanes)
    # and C (pixel channel groups never straddle a row / the cyclic roll).
    L = math.lcm(C, 128)

    r_flat = rendered_img.reshape(-1)
    f_flat = real_img.reshape(-1)

    E_main = (E // L) * L
    tail = E - E_main

    # Non-divisible tail (< L elements): tiny pure-JAX epilogue.  This replaces
    # the old jnp.pad of both full arrays (no extra full HBM pass).  Note: the
    # prefix slice below may still copy E_main elements, but is only reached
    # when E % L != 0; the common case is a zero-copy reshape.
    tail_loss = jnp.float32(0.0)
    if tail:
        ft = f_flat[E_main:].reshape(-1, C).astype(jnp.float32)
        st = r_flat[E_main:].reshape(-1, C).astype(jnp.float32)
        dt = ft - st
        mt = jnp.mean(jnp.abs(dt), axis=-1, keepdims=True) < threshold
        tail_loss = jnp.sum(jnp.where(mt, dt * dt, 0.0))
        r_flat = jax.lax.slice_in_dim(r_flat, 0, E_main)
        f_flat = jax.lax.slice_in_dim(f_flat, 0, E_main)

    R = E_main // L
    if R == 0:                        # everything fit in the tail epilogue
        return tail_loss

    r2 = r_flat.reshape(R, L)         # zero-copy when E % L == 0
    f2 = f_flat.reshape(R, L)

    itemsize = jnp.dtype(rendered_img.dtype).itemsize
    sub = {4: 8, 2: 16, 1: 32}.get(itemsize, 8)   # packed sublane multiple
    bytes_per_row = L * itemsize
    Tc = max(sub, (target_step_bytes // bytes_per_row) // sub * sub)
    if Tc >= R:
        if R >= 2 * sub:
            # Split into >=2 row-chunks so the parallel outer axis can feed
            # both v7x TensorCores even for small/medium images.
            Tc = pl.cdiv(pl.cdiv(R, 2), sub) * sub
        else:
            Tc = R                    # tiny input: single full-extent block

    n_full = R // Tc
    tail_rows = R - n_full * Tc
    n_chunks = n_full + (1 if tail_rows else 0)
    n_outer = 2 if n_chunks >= 2 else 1           # 'parallel' axis
    n_inner = pl.cdiv(n_chunks, n_outer)          # 'arbitrary' accumulation axis
    last_chunk = n_chunks - 1

    if n_outer * n_inner == n_chunks:
        in_map = lambda o, i: (o * n_inner + i, 0)
    else:
        # Clamp so the (<=1) grid-padding step never issues an OOB DMA.
        in_map = lambda o, i: (jnp.minimum(o * n_inner + i, last_chunk), 0)

    partials = pl.pallas_call(
        _make_kernel(C=C, L=L, Tc=Tc, n_full=n_full, tail_rows=tail_rows,
                     n_inner=n_inner, n_outer=n_outer, threshold=threshold),
        out_shape=jax.ShapeDtypeStruct((n_outer, 1, 128), jnp.float32),
        grid_spec=pltpu.PrefetchScalarGridSpec(
            num_scalar_prefetch=0,
            grid=(n_outer, n_inner),
            in_specs=[
                pl.BlockSpec((Tc, L), in_map),
                pl.BlockSpec((Tc, L), in_map),
            ],
            out_specs=pl.BlockSpec((1, 1, 128), lambda o, i: (o, 0, 0)),
        ),
        compiler_params=pltpu.CompilerParams(
            dimension_semantics=("parallel", "arbitrary"),
            vmem_limit_bytes=32 * 1024 * 1024,    # safe on v5e/v6e/v7x
        ),
    )(r2, f2)
    return jnp.sum(partials) + tail_loss


def _reference(rendered_img, real_img):
    # Pure-JAX reference matching the PyTorch forward exactly.
    f = real_img.astype(jnp.float32)
    s = rendered_img.astype(jnp.float32)
    diff_mean = jnp.mean(jnp.abs(f - s), axis=-1, keepdims=True)
    mask = (diff_mean < 0.1).astype(jnp.float32)
    d = mask * (f - s)
    return jnp.sum(d * d)


if __name__ == "__main__":
    key = jax.random.PRNGKey(0)
    loss_fn = jax.jit(photometric_loss)

    # Test 1: divisible case (fully zero-copy path).
    k1, k2 = jax.random.split(key)
    B, H, W, C = 2, 16, 16, 4
    real_img = jax.random.uniform(k1, (B, H, W, C), dtype=jnp.float32)
    rendered_img = real_img + 0.15 * jax.random.normal(
        k2, (B, H, W, C), dtype=jnp.float32)
    loss = jax.block_until_ready(loss_fn(rendered_img, real_img))
    ref = jax.block_until_ready(_reference(rendered_img, real_img))
    assert jnp.allclose(loss, ref, rtol=1e-5, atol=1e-5), (loss, ref)

    # Test 2: non-divisible case (ragged last chunk + pure-JAX tail epilogue).
    k3, k4 = jax.random.split(k2)
    real2 = jax.random.uniform(k3, (1, 41, 16, 4), dtype=jnp.float32)
    rend2 = real2 + 0.15 * jax.random.normal(k4, (1, 41, 16, 4),
                                             dtype=jnp.float32)
    loss2 = jax.block_until_ready(loss_fn(rend2, real2))
    ref2 = jax.block_until_ready(_reference(rend2, real2))
    assert jnp.allclose(loss2, ref2, rtol=1e-5, atol=1e-5), (loss2, ref2)

    print("KERNEL_OK")
</pallas_src>

<mosaic_0001>
module attributes {stable_mosaic.version = 11 : i64} {
  func.func @kernel(%arg0: i32, %arg1: i32, %arg2: memref<8x128xf32, #tpu.memory_space<vmem>>, %arg3: memref<8x128xf32, #tpu.memory_space<vmem>>, %arg4: memref<1x1x128xf32, #tpu.memory_space<vmem>>) attributes {dimension_semantics = [#tpu.dimension_semantics<parallel>, #tpu.dimension_semantics<arbitrary>], iteration_bounds = array<i64: 2, 1>, scalar_prefetch = 0 : i64, scratch_operands = 0 : i64, tpu.core_type = #tpu.core_type<tc>, window_params = [{transform_indices = @transform_0, window_bounds = array<i64: 8, 128>}, {transform_indices = @transform_1, window_bounds = array<i64: 8, 128>}, {transform_indices = @transform_2, window_bounds = array<i64: 1, 1, 128>}]} {
    %c0_i32 = arith.constant 0 : i32
    %0 = arith.cmpi eq, %arg1, %c0_i32 : i32
    %1 = arith.extui %0 : i1 to i32
    %c0_i32_0 = arith.constant 0 : i32
    %2 = arith.cmpi ne, %1, %c0_i32_0 : i32
    scf.if %2 {
      %cst_23 = arith.constant 0.000000e+00 : f32
      %61 = vector.broadcast %cst_23 : f32 to vector<1x1x128xf32>
      %c0_24 = arith.constant 0 : index
      %c0_25 = arith.constant 0 : index
      %c0_26 = arith.constant 0 : index
      %62 = vector.load %arg4[%c0_24, %c0_25, %c0_26] : memref<1x1x128xf32, #tpu.memory_space<vmem>>, vector<1x1x128xf32>
      tpu.vector_store %arg4[%c0_24, %c0_25, %c0_26], %61 {strides = array<i32>} : memref<1x1x128xf32, #tpu.memory_space<vmem>>, vector<1x1x128xf32>,
    } else {
    }
    %3 = tpu.iota {dimensions = array<i32: 1>} : vector<1x128xi32>
    %c4_i32 = arith.constant 4 : i32
    %c0_i32_1 = arith.constant 0 : i32
    %4 = arith.cmpi eq, %c4_i32, %c0_i32_1 : i32
    %c1_i32 = arith.constant 1 : i32
    %5 = arith.select %4, %c1_i32, %c4_i32 : i32
    %6 = vector.broadcast %5 : i32 to vector<1x128xi32>
    %7 = arith.remsi %3, %6 : vector<1x128xi32>
    %c0_i32_2 = arith.constant 0 : i32
    %8 = vector.broadcast %c0_i32_2 : i32 to vector<1x128xi32>
    %9 = arith.cmpi ne, %7, %8 : vector<1x128xi32>
    %c0_i32_3 = arith.constant 0 : i32
    %10 = vector.broadcast %c0_i32_3 : i32 to vector<1x128xi32>
    %11 = arith.cmpi slt, %7, %10 : vector<1x128xi32>
    %c0_i32_4 = arith.constant 0 : i32
    %12 = arith.cmpi slt, %5, %c0_i32_4 : i32
    %13 = vector.broadcast %12 : i1 to vector<1x128xi1>
    %14 = vector.broadcast %13 : vector<1x128xi1> to vector<1x128xi1>
    %15 = arith.xori %11, %14 : vector<1x128xi1>
    %16 = arith.andi %15, %9 : vector<1x128xi1>
    %17 = vector.broadcast %5 : i32 to vector<1x128xi32>
    %18 = arith.addi %7, %17 : vector<1x128xi32>
    %19 = arith.select %16, %18, %7 : vector<1x128xi1>, vector<1x128xi32>
    %c1_i32_5 = arith.constant 1 : i32
    %20 = tpu.dynamic_rotate %3 by %c1_i32_5 dim 1 : vector<1x128xi32>, i32 -> vector<1x128xi32>
    %c3_i32 = arith.constant 3 : i32
    %21 = vector.broadcast %c3_i32 : i32 to vector<1x128xi32>
    %22 = arith.cmpi eq, %19, %21 : vector<1x128xi32>
    %c1_i32_6 = arith.constant 1 : i32
    %23 = vector.broadcast %c1_i32_6 : i32 to vector<1x128xi32>
    %24 = arith.subi %3, %23 : vector<1x128xi32>
    %25 = arith.cmpi eq, %20, %24 : vector<1x128xi32>
    %26 = arith.andi %22, %25 : vector<1x128xi1>
    %c0_i32_7 = arith.constant 0 : i32
    %27 = vector.broadcast %c0_i32_7 : i32 to vector<1x128xi32>
    %28 = arith.cmpi eq, %19, %27 : vector<1x128xi32>
    %c1_i32_8 = arith.constant 1 : i32
    %29 = vector.broadcast %c1_i32_8 : i32 to vector<1x128xi32>
    %30 = arith.addi %3, %29 : vector<1x128xi32>
    %31 = arith.cmpi eq, %20, %30 : vector<1x128xi32>
    %32 = arith.andi %28, %31 : vector<1x128xi1>
    %33 = arith.ori %26, %32 : vector<1x128xi1>
    %c0 = arith.constant 0 : index
    %c0_9 = arith.constant 0 : index
    %34 = vector.load %arg2[%c0, %c0_9] : memref<8x128xf32, #tpu.memory_space<vmem>>, vector<8x128xf32>
    %c0_10 = arith.constant 0 : index
    %c0_11 = arith.constant 0 : index
    %35 = vector.load %arg3[%c0_10, %c0_11] : memref<8x128xf32, #tpu.memory_space<vmem>>, vector<8x128xf32>
    %36 = arith.subf %35, %34 : vector<8x128xf32>
    %37 = arith.mulf %36, %36 : vector<8x128xf32>
    %38 = math.absf %36 : vector<8x128xf32>
    %c1_i32_12 = arith.constant 1 : i32
    %39 = tpu.dynamic_rotate %38 by %c1_i32_12 dim 1 : vector<8x128xf32>, i32 -> vector<8x128xf32>
    %40 = arith.addf %38, %39 : vector<8x128xf32>
    %c1_i32_13 = arith.constant 1 : i32
    %41 = tpu.dynamic_rotate %37 by %c1_i32_13 dim 1 : vector<8x128xf32>, i32 -> vector<8x128xf32>
    %42 = arith.addf %37, %41 : vector<8x128xf32>
    %c2_i32 = arith.constant 2 : i32
    %43 = tpu.dynamic_rotate %40 by %c2_i32 dim 1 : vector<8x128xf32>, i32 -> vector<8x128xf32>
    %44 = arith.addf %40, %43 : vector<8x128xf32>
    %c2_i32_14 = arith.constant 2 : i32
    %45 = tpu.dynamic_rotate %42 by %c2_i32_14 dim 1 : vector<8x128xf32>, i32 -> vector<8x128xf32>
    %46 = arith.addf %42, %45 : vector<8x128xf32>
    %cst = arith.constant 4.000000e-01 : f32
    %47 = vector.broadcast %cst : f32 to vector<8x128xf32>
    %48 = arith.cmpf olt, %44, %47 : vector<8x128xf32>
    %49 = vector.broadcast %33 : vector<1x128xi1> to vector<8x128xi1>
    %50 = arith.andi %49, %48 : vector<8x128xi1>
    %cst_15 = arith.constant 0.000000e+00 : f32
    %51 = vector.broadcast %cst_15 : f32 to vector<8x128xf32>
    %52 = arith.select %50, %46, %51 : vector<8x128xi1>, vector<8x128xf32>
    %c0_16 = arith.constant 0 : index
    %c0_17 = arith.constant 0 : index
    %c0_18 = arith.constant 0 : index
    %53 = vector.load %arg4[%c0_16, %c0_17, %c0_18] : memref<1x1x128xf32, #tpu.memory_space<vmem>>, vector<1x1x128xf32>
    %54 = vector.shape_cast %53 : vector<1x1x128xf32> to vector<1x128xf32>
    %cst_19 = arith.constant dense<0.000000e+00> : vector<128xf32>
    %55 = vector.multi_reduction <add>, %52, %cst_19 [0] : vector<8x128xf32> to vector<128xf32>
    %56 = vector.shape_cast %55 : vector<128xf32> to vector<1x128xf32>
    %57 = arith.addf %54, %56 : vector<1x128xf32>
    %c0_20 = arith.constant 0 : index
    %c0_21 = arith.constant 0 : index
    %c0_22 = arith.constant 0 : index
    %58 = vector.load %arg4[%c0_20, %c0_21, %c0_22] : memref<1x1x128xf32, #tpu.memory_space<vmem>>, vector<1x1x128xf32>
    %59 = vector.shape_cast %58 : vector<1x1x128xf32> to vector<1x128xf32>
    %60 = vector.shape_cast %57 : vector<1x128xf32> to vector<1x1x128xf32>
    tpu.vector_store %arg4[%c0_20, %c0_21, %c0_22], %60 {strides = array<i32>} : memref<1x1x128xf32, #tpu.memory_space<vmem>>, vector<1x1x128xf32>,
    return
  }
  func.func @transform_0(%arg0: i32, %arg1: i32) -> (i32, i32) {
    %c1_i32 = arith.constant 1 : i32
    %0 = arith.muli %arg0, %c1_i32 : i32
    %1 = arith.addi %0, %arg1 : i32
    %c0_i32 = arith.constant 0 : i32
    %c0_i32_0 = arith.constant 0 : i32
    return %1, %c0_i32 : i32, i32
  }
  func.func @transform_1(%arg0: i32, %arg1: i32) -> (i32, i32) {
    %c1_i32 = arith.constant 1 : i32
    %0 = arith.muli %arg0, %c1_i32 : i32
    %1 = arith.addi %0, %arg1 : i32
    %c0_i32 = arith.constant 0 : i32
    %c0_i32_0 = arith.constant 0 : i32
    return %1, %c0_i32 : i32, i32
  }
  func.func @transform_2(%arg0: i32, %arg1: i32) -> (i32, i32, i32) {
    %c0_i32 = arith.constant 0 : i32
    %c0_i32_0 = arith.constant 0 : i32
    %c0_i32_1 = arith.constant 0 : i32
    return %arg0, %c0_i32, %c0_i32_0 : i32, i32, i32
  }
}

</mosaic_0001>

<bundles_post_ra>
// kernel: photometric_loss.1
= control target key start
LH: loop header
LB: loop body
LE: loop exit
PB: predicated region body
PF: predicated region fallthrough
CT: control target
= control target key end

     0   :  { %s393_s9 = smov 0   ;;  %s395_s10 = smov 0   ;;  %s434_s0 = inlined_call_operand.vmem [shape: f32[16,128], index: 0, kind: input, shape index: {}]   ;;  %s435_s1 = inlined_call_operand.vmem [shape: f32[16,128], index: 1, kind: input, shape index: {}]   ;;  %s436_s2 = inlined_call_operand.vmem [shape: f32[2,1,128], index: 2, kind: output, shape index: {}]  }
   0x1   :  { %s397_s11 = smov 0  }
   0x2 LB: > { %s24_s12 = sadd.s32 1, %s368_s10  ;;  %p316_p0 = scmp.ge.s32.totalorder %s372_s11, 1  ;;  %s372_s11 = sphi %s397_s11, %s12_s11   ;;  %s368_s10 = sphi %s395_s10, %s438_s10   ;;  %s364_s9 = sphi %s393_s9, %s437_s9  }
   0x3   : > { %p26_p1 = scmp.ge.s32.totalorder %s24_s12, 2  ;;  %p140_p2 = scmp.lt.s32.totalorder %s372_s11, 3 }
   0x5   : > { %s440_s12 = smov (%p26_p1, %s24_s12), 0  ;;  %p141_p3 = pnand %p316_p0, %p140_p2 }
   0x6   : > { %p166_p4 = scmp.lt.s32.totalorder (!%p141_p3), %s364_s9, 1  ;;  %s374_s17 = smov (!%p141_p3), 1  }
   0x7   : > { %144 = sbr.rel (%p141_p3) target bundleno = 275 (0x113), region = 28  ;;  %s377_s24 = smov (!%p141_p3), 2  }
   0xc   : > { %v185_v0 = vlaneseq  ;;  %s442_s9 = smov (!%p166_p4, %s364_s9), 1  ;;  %v375_v2 = vmov 0.0   ;;  %v376_v14 = vmov 0  }
   0xd   : > { %s317_s13 = sshll.u32 %s442_s9, 3  ;;  %s414_s16 = scalar_lea.vmem %s436_s2, %s442_s9 }
   0xe   : > { %v186_v1 = vand.u32 127, %v185_v0  ;;  %s169_s20 = scalar_lea.vmem %s434_s0, %s317_s13  ;;  %s175_s23 = scalar_lea.vmem %s435_s1, %s317_s13  ;;  %184 = vst [vmem:[%s414_s16] sm:$0x1] %v375_v2  ;;  %v230_v11 = vshrl.u32 %v185_v0, 7 }
   0xf   : > { %v210_v3 = vld [vmem:[%s169_s20] sm:$0xff] }
  0x10   : > { %199 = vrot.lane.b32.xlu1 %v186_v1, %s374_s17  ;;  %v211_v4 = vld [vmem:[%s175_s23] sm:$0xff]  ;;  %v191_v8 = vand.u32 3, %v186_v1  ;;  %v319_v9 = vadd.s32 4294967295, %v186_v1  ;;  %v206_v10 = vadd.s32 1, %v186_v1  ;;  %v231_v13 = vsub.s32 0, %v230_v11 }
  0x11   : > { %v212_v5 = vsub.f32 %v211_v4, %v210_v3 }
  0x12   : > { %vm201_vm0 = vcmp.eq.s32.totalorder %v191_v8, 3  ;;  %vm205_vm1 = vcmp.eq.s32.totalorder %v191_v8, 0 }
  0x13   : > { %v214_v6 = vand.u32 2147483647, %v212_v5  ;;  %v213_v7 = vmul.f32 %v212_v5, %v212_v5 }
  0x15   : > { %215 = vrot.lane.b32.xlu0 %v214_v6, %s374_s17  ;;  %v236_v31 = vld [vmem:[%s414_s16] sm:$0x1] }
  0x19   : > { %218 = vrot.lane.b32.xlu0 %v213_v7, %s374_s17 }
  0x82   : > { %v200_v12 = vpop.permute.xlu1 %199 }
  0x83   : > { %vm203_vm2 = vcmp.eq.s32.totalorder %v200_v12, %v319_v9  ;;  %vm207_vm3 = vcmp.eq.s32.totalorder %v200_v12, %v206_v10 }
  0x84   : > { %vm204_vm4 = vmand %vm201_vm0, %vm203_vm2 }
  0x85   : > { %vm208_vm5 = vmand %vm205_vm1, %vm207_vm3 }
  0x86   : > { %vm209_vm6 = vmor %vm204_vm4, %vm208_vm5 }
  0x87   : > { %v228_v15 = vsel %vm209_vm6, 1, %v376_v14  ;;  %v216_v17 = vpop.permute.xlu0 %215 }
  0x88   : > { %v232_v16 = vrot.slane %v228_v15, %v231_v13  ;;  %v217_v18 = vadd.f32 %v216_v17, %v214_v6 }
  0x8a   : > { %221 = vrot.lane.b32.xlu1 %v217_v18, %s377_s24  ;;  %vm233_vm7 = vcmp.eq.s32.totalorder %v232_v16, 1 }
  0x8b   : > { %v219_v19 = vpop.permute.xlu0 %218 }
  0x8c   : > { %v220_v20 = vadd.f32 %v219_v19, %v213_v7 }
  0x8e   : > { %224 = vrot.lane.b32.xlu0 %v220_v20, %s377_s24 }
  0xfc   : > { %v222_v21 = vpop.permute.xlu1 %221 }
  0xfd   : > { %v223_v22 = vadd.f32 %v222_v21, %v217_v18 }
  0xff   : > { %vm227_vm8 = vcmp.lt.f32.partialorder %v223_v22, 0.4 }
 0x100   : > { %v225_v23 = vpop.permute.xlu0 %224  ;;  %vm234_vm9 = vmand %vm233_vm7, %vm227_vm8 }
 0x101   : > { %v226_v24 = vadd.f32 %v225_v23, %v220_v20 }
 0x103   : > { %v235_v25 = vsel %vm234_vm9, %v226_v24, 0.0 }
 0x104   : > { %v237_v26 = vrot.slane %v235_v25, 4 }
 0x106   : > { %v238_v27 = vadd.f32 %v237_v26, %v235_v25 }
 0x108   : > { %v239_v28 = vrot.slane %v238_v27, 2 }
 0x10a   : > { %v240_v29 = vadd.f32 %v239_v28, %v238_v27 }
 0x10c   : > { %v241_v30 = vrot.slane %v240_v29, 1 }
 0x10e   : > { %v242_v32 = vadd.f32 %v241_v30, %v240_v29 }
 0x110   : > { %v243_v33 = vadd.f32 %v242_v32, %v236_v31 }
 0x112   : > { %244 = vst [vmem:[%s414_s16] sm:$0x1] %v243_v33 }
 0x113 PF: > { %s12_s11 = sadd.s32 1, %s372_s11   ;;  %s437_s9 = smov %s368_s10 }
 0x114   : > { %p9_p5 = scmp.ge.s32.totalorder %s12_s11, 4   ;;  %s438_s10 = smov %s440_s12 }
 0x116   :  { %11 = sbr.rel (!%p9_p5) target bundleno = 2 (0x2), region = 65 }

</bundles_post_ra>
